<compile_context>
chip_gen: v7x
topology: tpu7x:2x2x1
jax: 0.10.0
libtpu: 0.0.40
codegen_flags: <defaults>
</compile_context>

<pallas_src>
import functools

import jax
import jax.numpy as jnp
from jax.experimental import pallas as pl
from jax.experimental.pallas import tpu as pltpu


DEFAULT_TILE_B = 512   # max batch rows per grid step (multiple of 8)


def vae_kernel(x_ref, eps_ref,
               ew1_ref, eb1_ref, ew2_ref, eb2_ref,
               dw1_ref, db1_ref, dw2_ref, db2_ref,
               out_ref, *, z_dim, dec_lanes):
    x = x_ref[...]            # (TB, 1)  f32
    eps = eps_ref[...]        # (TB, Z)

    # ---- Encoder layer 1: Linear(1 -> H) + ReLU.
    # K == 1 contraction: a VPU broadcast multiply-add, no MXU pass needed.
    h = jnp.maximum(x * ew1_ref[...] + eb1_ref[...], 0.0)                        # (TB, H)

    # ---- Encoder layer 2: single merged Linear(H -> 2*Z) on the MXU (one N=2Z pass
    # instead of two N=Z passes); mean / log-std split is a static lane slice.
    enc = jnp.dot(h, ew2_ref[...], preferred_element_type=jnp.float32) + eb2_ref[...]
    q_mean = enc[:, :z_dim]                                                      # (TB, Z)
    q_std = jnp.exp(enc[:, z_dim:])                                              # (TB, Z)

    # ---- Reparameterized sample + softmax over dim=1 (the z lanes).
    # Exact reciprocal: this kernel is DMA/overhead-bound, the exact op costs nothing
    # and keeps sum(s_z) == 1 to ~1e-7.
    z = q_mean + q_std * eps
    e = jnp.exp(z - jnp.max(z, axis=-1, keepdims=True))
    s_z = e * pl.reciprocal(jnp.sum(e, axis=-1, keepdims=True))                  # (TB, Z)

    # ---- Decoder layer 1: Linear(Z -> H) + ReLU  (K = Z is MXU-worthy).
    dh = jnp.maximum(
        jnp.dot(s_z, dw1_ref[...], preferred_element_type=jnp.float32) + db1_ref[...],
        0.0)                                                                     # (TB, H)

    # ---- Decoder layer 2: Linear(H -> 1).  N == 1: VPU multiply + lane reduce.
    logits = jnp.sum(dh * dw2_ref[...], axis=-1, keepdims=True) + db2_ref[...]   # (TB, 1)

    # ---- Softmax over dim=1 of a width-1 row is identically 1.0: exp(x - x) gives that
    # exactly (and preserves NaN propagation) without a max/sum/reciprocal chain.
    dec = jnp.broadcast_to(jnp.exp(logits - logits), (x.shape[0], dec_lanes))    # (TB, pad)

    # ---- One lane-dense 128-wide packed store (single unmasked vst) instead of four
    # narrow masked stores: lanes [0:Z)=q_mean, [Z:2Z)=q_std, [2Z:3Z)=s_z, rest=decoding.
    out_ref[...] = jnp.concatenate([q_mean, q_std, s_z, dec], axis=-1).astype(out_ref.dtype)


def _pick_tile_b(batch, desired=DEFAULT_TILE_B):
    """Rows per grid step: multiple of 8, capped at `desired`, and chosen so the grid has
    >= 2 steps whenever the batch allows it (v7x has 2 TensorCores sharing the batch axis)."""
    if batch <= 8:
        return 8
    half = -(-batch // 2)            # ceil(batch / 2)
    half = -(-half // 8) * 8         # round up to a multiple of 8
    return max(8, min(desired, half))


def vae_forward(x, eps, params, *, tile_b=None):
    ew1, eb1, ew2, eb2, dw1, db1, dw2, db2 = params
    B, din = x.shape
    hid = ew1.shape[1]
    z_dim = ew2.shape[1] // 2
    dout = dw2.shape[0]
    assert din == 1, "kernel's VPU fast path for encoder layer 1 assumes input_dim == 1"
    assert dout == 1, "decoder second linear is stored as a (1, hidden) row"
    assert eps.shape == (B, z_dim)

    pack = -(-(3 * z_dim + 1) // 128) * 128       # lane-dense packed output width
    dec_lanes = pack - 3 * z_dim

    if tile_b is None:
        tile_b = _pick_tile_b(B)
    nb = pl.cdiv(B, tile_b)
    Bp = nb * tile_b
    if Bp != B:
        # Fallback only: callers should round the batch to tile_b to avoid this extra HBM
        # pass.  Row-wise independent math, padded rows are sliced off below.
        x = jnp.pad(x, ((0, Bp - B), (0, 0)))
        eps = jnp.pad(eps, ((0, Bp - B), (0, 0)))

    def stream(width):            # streamed / double-buffered over the batch grid
        return pl.BlockSpec((tile_b, width), lambda i: (i, 0))

    def resident(arr):            # constant block index -> stays in VMEM across grid steps
        return pl.BlockSpec(arr.shape, lambda i: (0, 0))

    flops = 2 * Bp * (din * hid + hid * 2 * z_dim + z_dim * hid + hid * dout)
    transcendentals = Bp * (2 * z_dim + 1)
    operands = [x, eps, ew1, eb1, ew2, eb2, dw1, db1, dw2, db2]
    bytes_accessed = sum(int(a.size) * a.dtype.itemsize for a in operands) + 4 * Bp * pack

    kernel = functools.partial(vae_kernel, z_dim=z_dim, dec_lanes=dec_lanes)

    packed = pl.pallas_call(
        kernel,
        out_shape=jax.ShapeDtypeStruct((Bp, pack), jnp.float32),
        grid_spec=pltpu.PrefetchScalarGridSpec(
            num_scalar_prefetch=0,
            grid=(nb,),
            in_specs=[
                stream(din),          # x
                stream(z_dim),        # eps
                resident(ew1), resident(eb1),
                resident(ew2), resident(eb2),
                resident(dw1), resident(db1),
                resident(dw2), resident(db2),
            ],
            out_specs=pl.BlockSpec((tile_b, pack), lambda i: (i, 0)),
        ),
        compiler_params=pltpu.CompilerParams(
            dimension_semantics=("parallel",),    # shard batch tiles over TCs (v7x)
        ),
        cost_estimate=pl.CostEstimate(
            flops=int(flops),
            transcendentals=int(transcendentals),
            bytes_accessed=int(bytes_accessed),
        ),
    )(x, eps, ew1, eb1, ew2, eb2, dw1, db1, dw2, db2)

    q_mean = packed[:B, 0:z_dim]
    q_std = packed[:B, z_dim:2 * z_dim]
    s_z = packed[:B, 2 * z_dim:3 * z_dim]
    decoding = packed[:B, 3 * z_dim:3 * z_dim + 1]
    return decoding, (q_mean, q_std), s_z


def init_params(key, input_dim, z_dim, hidden_dim):
    """Deterministic synthetic init (stands in for initialize_weights).  Weights stored
    transposed ((in, out)) so the kernel computes x @ W + b."""
    ks = jax.random.split(key, 8)
    ew1 = jax.random.normal(ks[0], (input_dim, hidden_dim), jnp.float32) * 0.1
    eb1 = jax.random.normal(ks[1], (1, hidden_dim), jnp.float32) * 0.01
    ew2 = jax.random.normal(ks[2], (hidden_dim, 2 * z_dim), jnp.float32) * 0.1
    eb2 = jax.random.normal(ks[3], (1, 2 * z_dim), jnp.float32) * 0.01
    dw1 = jax.random.normal(ks[4], (z_dim, hidden_dim), jnp.float32) * 0.1
    db1 = jax.random.normal(ks[5], (1, hidden_dim), jnp.float32) * 0.01
    dw2 = jax.random.normal(ks[6], (input_dim, hidden_dim), jnp.float32) * 0.1  # (out=1, H)
    db2 = jax.random.normal(ks[7], (1, input_dim), jnp.float32) * 0.01
    return (ew1, eb1, ew2, eb2, dw1, db1, dw2, db2)


if __name__ == "__main__":
    z_dim, input_dim, hidden_dim = 32, 1, 64     # VAE defaults
    batch = 16                                   # -> tile_b=8, 2 batch-grid steps

    key = jax.random.PRNGKey(0)
    kx, keps, kp = jax.random.split(key, 3)
    x = jax.random.normal(kx, (batch, input_dim), jnp.float32)
    eps = jax.random.normal(keps, (batch, z_dim), jnp.float32)   # rsample() noise
    params = init_params(kp, input_dim, z_dim, hidden_dim)

    decoding, (q_mean, q_std), s_z = jax.block_until_ready(vae_forward(x, eps, params))

    # Pure-JAX reference (same math as the PyTorch module, same eps).
    ew1, eb1, ew2, eb2, dw1, db1, dw2, db2 = params
    mm = lambda a, b: jnp.dot(a, b, precision=jax.lax.Precision.HIGHEST)
    h = jnp.maximum(mm(x, ew1) + eb1, 0.0)
    enc = mm(h, ew2) + eb2
    ref_mean = enc[:, :z_dim]
    ref_std = jnp.exp(enc[:, z_dim:])
    ref_z = ref_mean + ref_std * eps
    ref_sz = jax.nn.softmax(ref_z, axis=1)
    dh = jnp.maximum(mm(ref_sz, dw1) + db1, 0.0)
    ref_logits = mm(dh, dw2.T) + db2
    ref_dec = jax.nn.softmax(ref_logits, axis=1)

    assert jnp.allclose(q_mean, ref_mean, atol=5e-5, rtol=1e-3)
    assert jnp.allclose(q_std, ref_std, atol=5e-5, rtol=1e-3)
    assert jnp.allclose(s_z, ref_sz, atol=1e-5, rtol=1e-3)
    assert jnp.allclose(decoding, ref_dec, atol=1e-6)
    assert jnp.allclose(jnp.sum(s_z, axis=1), 1.0, atol=1e-5)

    print("KERNEL_OK")
</pallas_src>

<mosaic_0001>
module attributes {stable_mosaic.version = 11 : i64} {
  func.func @vae_kernel(%arg0: i32, %arg1: memref<8x1xf32, #tpu.memory_space<vmem>>, %arg2: memref<8x32xf32, #tpu.memory_space<vmem>>, %arg3: memref<1x64xf32, #tpu.memory_space<vmem>>, %arg4: memref<1x64xf32, #tpu.memory_space<vmem>>, %arg5: memref<64x64xf32, #tpu.memory_space<vmem>>, %arg6: memref<1x64xf32, #tpu.memory_space<vmem>>, %arg7: memref<32x64xf32, #tpu.memory_space<vmem>>, %arg8: memref<1x64xf32, #tpu.memory_space<vmem>>, %arg9: memref<1x64xf32, #tpu.memory_space<vmem>>, %arg10: memref<1x1xf32, #tpu.memory_space<vmem>>, %arg11: memref<8x128xf32, #tpu.memory_space<vmem>>) attributes {dimension_semantics = [#tpu.dimension_semantics<parallel>], iteration_bounds = array<i64: 2>, scalar_prefetch = 0 : i64, scratch_operands = 0 : i64, tpu.core_type = #tpu.core_type<tc>, window_params = [{transform_indices = @transform_0, window_bounds = array<i64: 8, 1>}, {transform_indices = @transform_1, window_bounds = array<i64: 8, 32>}, {pipeline_mode = #tpu.pipeline_mode<synchronous>, transform_indices = @transform_2, window_bounds = array<i64: 1, 64>}, {pipeline_mode = #tpu.pipeline_mode<synchronous>, transform_indices = @transform_3, window_bounds = array<i64: 1, 64>}, {pipeline_mode = #tpu.pipeline_mode<synchronous>, transform_indices = @transform_4, window_bounds = array<i64: 64, 64>}, {pipeline_mode = #tpu.pipeline_mode<synchronous>, transform_indices = @transform_5, window_bounds = array<i64: 1, 64>}, {pipeline_mode = #tpu.pipeline_mode<synchronous>, transform_indices = @transform_6, window_bounds = array<i64: 32, 64>}, {pipeline_mode = #tpu.pipeline_mode<synchronous>, transform_indices = @transform_7, window_bounds = array<i64: 1, 64>}, {pipeline_mode = #tpu.pipeline_mode<synchronous>, transform_indices = @transform_8, window_bounds = array<i64: 1, 64>}, {pipeline_mode = #tpu.pipeline_mode<synchronous>, transform_indices = @transform_9, window_bounds = array<i64: 1, 1>}, {transform_indices = @transform_10, window_bounds = array<i64: 8, 128>}]} {
    %c0 = arith.constant 0 : index
    %c0_0 = arith.constant 0 : index
    %0 = vector.load %arg1[%c0, %c0_0] : memref<8x1xf32, #tpu.memory_space<vmem>>, vector<8x1xf32>
    %c0_1 = arith.constant 0 : index
    %c0_2 = arith.constant 0 : index
    %1 = vector.load %arg2[%c0_1, %c0_2] : memref<8x32xf32, #tpu.memory_space<vmem>>, vector<8x32xf32>
    %c0_3 = arith.constant 0 : index
    %c0_4 = arith.constant 0 : index
    %2 = vector.load %arg3[%c0_3, %c0_4] : memref<1x64xf32, #tpu.memory_space<vmem>>, vector<1x64xf32>
    %3 = vector.broadcast %0 : vector<8x1xf32> to vector<8x64xf32>
    %4 = vector.broadcast %2 : vector<1x64xf32> to vector<8x64xf32>
    %5 = arith.mulf %3, %4 : vector<8x64xf32>
    %c0_5 = arith.constant 0 : index
    %c0_6 = arith.constant 0 : index
    %6 = vector.load %arg4[%c0_5, %c0_6] : memref<1x64xf32, #tpu.memory_space<vmem>>, vector<1x64xf32>
    %7 = vector.broadcast %6 : vector<1x64xf32> to vector<8x64xf32>
    %8 = arith.addf %5, %7 : vector<8x64xf32>
    %cst = arith.constant 0.000000e+00 : f32
    %9 = vector.broadcast %cst : f32 to vector<8x64xf32>
    %10 = arith.maximumf %8, %9 : vector<8x64xf32>
    %c0_7 = arith.constant 0 : index
    %c0_8 = arith.constant 0 : index
    %11 = vector.load %arg5[%c0_7, %c0_8] : memref<64x64xf32, #tpu.memory_space<vmem>>, vector<64x64xf32>
    %cst_9 = arith.constant dense<0.000000e+00> : vector<8x64xf32>
    %12 = tpu.matmul %10, %11, %cst_9 {dimension_numbers = #tpu.dot_dimension_numbers<[1], [0], [0], [1], [0, 0, 1, 1], [], []>} : vector<8x64xf32>, vector<64x64xf32>, vector<8x64xf32> -> vector<8x64xf32>
    %c0_10 = arith.constant 0 : index
    %c0_11 = arith.constant 0 : index
    %13 = vector.load %arg6[%c0_10, %c0_11] : memref<1x64xf32, #tpu.memory_space<vmem>>, vector<1x64xf32>
    %14 = vector.broadcast %13 : vector<1x64xf32> to vector<8x64xf32>
    %15 = arith.addf %12, %14 : vector<8x64xf32>
    %16 = vector.extract_strided_slice %15 {offsets = [0, 0], sizes = [8, 32], strides = [1, 1]} : vector<8x64xf32> to vector<8x32xf32>
    %17 = vector.extract_strided_slice %15 {offsets = [0, 32], sizes = [8, 32], strides = [1, 1]} : vector<8x64xf32> to vector<8x32xf32>
    %18 = math.exp %17 : vector<8x32xf32>
    %19 = arith.mulf %18, %1 : vector<8x32xf32>
    %20 = arith.addf %16, %19 : vector<8x32xf32>
    %cst_12 = arith.constant dense<0xFF800000> : vector<8xf32>
    %21 = vector.multi_reduction <maximumf>, %20, %cst_12 [1] : vector<8x32xf32> to vector<8xf32>
    %22 = vector.shape_cast %21 : vector<8xf32> to vector<8x1xf32>
    %23 = vector.broadcast %22 : vector<8x1xf32> to vector<8x32xf32>
    %24 = arith.subf %20, %23 : vector<8x32xf32>
    %25 = math.exp %24 : vector<8x32xf32>
    %cst_13 = arith.constant dense<0.000000e+00> : vector<8xf32>
    %26 = vector.multi_reduction <add>, %25, %cst_13 [1] : vector<8x32xf32> to vector<8xf32>
    %27 = vector.shape_cast %26 : vector<8xf32> to vector<8x1xf32>
    %28 = tpu.reciprocal %27 : vector<8x1xf32> -> vector<8x1xf32>
    %29 = vector.broadcast %28 : vector<8x1xf32> to vector<8x32xf32>
    %30 = arith.mulf %25, %29 : vector<8x32xf32>
    %c0_14 = arith.constant 0 : index
    %c0_15 = arith.constant 0 : index
    %31 = vector.load %arg7[%c0_14, %c0_15] : memref<32x64xf32, #tpu.memory_space<vmem>>, vector<32x64xf32>
    %cst_16 = arith.constant dense<0.000000e+00> : vector<8x64xf32>
    %32 = tpu.matmul %30, %31, %cst_16 {dimension_numbers = #tpu.dot_dimension_numbers<[1], [0], [0], [1], [0, 0, 1, 1], [], []>} : vector<8x32xf32>, vector<32x64xf32>, vector<8x64xf32> -> vector<8x64xf32>
    %c0_17 = arith.constant 0 : index
    %c0_18 = arith.constant 0 : index
    %33 = vector.load %arg8[%c0_17, %c0_18] : memref<1x64xf32, #tpu.memory_space<vmem>>, vector<1x64xf32>
    %34 = vector.broadcast %33 : vector<1x64xf32> to vector<8x64xf32>
    %35 = arith.addf %32, %34 : vector<8x64xf32>
    %cst_19 = arith.constant 0.000000e+00 : f32
    %36 = vector.broadcast %cst_19 : f32 to vector<8x64xf32>
    %37 = arith.maximumf %35, %36 : vector<8x64xf32>
    %c0_20 = arith.constant 0 : index
    %c0_21 = arith.constant 0 : index
    %38 = vector.load %arg9[%c0_20, %c0_21] : memref<1x64xf32, #tpu.memory_space<vmem>>, vector<1x64xf32>
    %39 = vector.broadcast %38 : vector<1x64xf32> to vector<8x64xf32>
    %40 = arith.mulf %37, %39 : vector<8x64xf32>
    %cst_22 = arith.constant dense<0.000000e+00> : vector<8xf32>
    %41 = vector.multi_reduction <add>, %40, %cst_22 [1] : vector<8x64xf32> to vector<8xf32>
    %42 = vector.shape_cast %41 : vector<8xf32> to vector<8x1xf32>
    %c0_23 = arith.constant 0 : index
    %c0_24 = arith.constant 0 : index
    %43 = vector.load %arg10[%c0_23, %c0_24] : memref<1x1xf32, #tpu.memory_space<vmem>>, vector<1x1xf32>
    %44 = vector.broadcast %43 : vector<1x1xf32> to vector<8x1xf32>
    %45 = arith.addf %42, %44 : vector<8x1xf32>
    %46 = arith.subf %45, %45 : vector<8x1xf32>
    %47 = math.exp %46 : vector<8x1xf32>
    %48 = vector.shape_cast %47 : vector<8x1xf32> to vector<8x1xf32>
    %49 = vector.broadcast %48 : vector<8x1xf32> to vector<8x32xf32>
    %50 = tpu.concatenate %16, %18, %30, %49 in 1 : vector<8x32xf32>, vector<8x32xf32>, vector<8x32xf32>, vector<8x32xf32> -> vector<8x128xf32>
    %c0_25 = arith.constant 0 : index
    %c0_26 = arith.constant 0 : index
    %51 = vector.load %arg11[%c0_25, %c0_26] : memref<8x128xf32, #tpu.memory_space<vmem>>, vector<8x128xf32>
    tpu.vector_store %arg11[%c0_25, %c0_26], %50 {strides = array<i32>} : memref<8x128xf32, #tpu.memory_space<vmem>>, vector<8x128xf32>,
    return
  }
  func.func @transform_0(%arg0: i32) -> (i32, i32) {
    %c0_i32 = arith.constant 0 : i32
    %c0_i32_0 = arith.constant 0 : i32
    return %arg0, %c0_i32 : i32, i32
  }
  func.func @transform_1(%arg0: i32) -> (i32, i32) {
    %c0_i32 = arith.constant 0 : i32
    %c0_i32_0 = arith.constant 0 : i32
    return %arg0, %c0_i32 : i32, i32
  }
  func.func @transform_2(%arg0: i32) -> (i32, i32) {
    %c0_i32 = arith.constant 0 : i32
    %c0_i32_0 = arith.constant 0 : i32
    %c0_i32_1 = arith.constant 0 : i32
    return %c0_i32, %c0_i32_0 : i32, i32
  }
  func.func @transform_3(%arg0: i32) -> (i32, i32) {
    %c0_i32 = arith.constant 0 : i32
    %c0_i32_0 = arith.constant 0 : i32
    %c0_i32_1 = arith.constant 0 : i32
    return %c0_i32, %c0_i32_0 : i32, i32
  }
  func.func @transform_4(%arg0: i32) -> (i32, i32) {
    %c0_i32 = arith.constant 0 : i32
    %c0_i32_0 = arith.constant 0 : i32
    %c0_i32_1 = arith.constant 0 : i32
    return %c0_i32, %c0_i32_0 : i32, i32
  }
  func.func @transform_5(%arg0: i32) -> (i32, i32) {
    %c0_i32 = arith.constant 0 : i32
    %c0_i32_0 = arith.constant 0 : i32
    %c0_i32_1 = arith.constant 0 : i32
    return %c0_i32, %c0_i32_0 : i32, i32
  }
  func.func @transform_6(%arg0: i32) -> (i32, i32) {
    %c0_i32 = arith.constant 0 : i32
    %c0_i32_0 = arith.constant 0 : i32
    %c0_i32_1 = arith.constant 0 : i32
    return %c0_i32, %c0_i32_0 : i32, i32
  }
  func.func @transform_7(%arg0: i32) -> (i32, i32) {
    %c0_i32 = arith.constant 0 : i32
    %c0_i32_0 = arith.constant 0 : i32
    %c0_i32_1 = arith.constant 0 : i32
    return %c0_i32, %c0_i32_0 : i32, i32
  }
  func.func @transform_8(%arg0: i32) -> (i32, i32) {
    %c0_i32 = arith.constant 0 : i32
    %c0_i32_0 = arith.constant 0 : i32
    %c0_i32_1 = arith.constant 0 : i32
    return %c0_i32, %c0_i32_0 : i32, i32
  }
  func.func @transform_9(%arg0: i32) -> (i32, i32) {
    %c0_i32 = arith.constant 0 : i32
    %c0_i32_0 = arith.constant 0 : i32
    %c0_i32_1 = arith.constant 0 : i32
    return %c0_i32, %c0_i32_0 : i32, i32
  }
  func.func @transform_10(%arg0: i32) -> (i32, i32) {
    %c0_i32 = arith.constant 0 : i32
    %c0_i32_0 = arith.constant 0 : i32
    return %arg0, %c0_i32 : i32, i32
  }
}

</mosaic_0001>

<bundles_post_ra>
// kernel: tpu_custom_call.1
= control target key start
LH: loop header
LB: loop body
LE: loop exit
PB: predicated region body
PF: predicated region fallthrough
CT: control target
= control target key end

     0   :  { %s1381_s0 = inlined_call_operand.vmem [shape: f32[16,1], index: 0, kind: input, shape index: {}]   ;;  %s1382_s1 = inlined_call_operand.hbm [shape: f32[16,32], index: 1, kind: input, shape index: {}]   ;;  %s1383_s2 = inlined_call_operand.vmem [shape: f32[1,64], index: 2, kind: input, shape index: {}]   ;;  %s1384_s3 = inlined_call_operand.vmem [shape: f32[1,64], index: 3, kind: input, shape index: {}]   ;;  %s1385_s4 = inlined_call_operand.hbm [shape: f32[64,64], index: 4, kind: input, shape index: {}]   ;;  %s1386_s5 = inlined_call_operand.vmem [shape: f32[1,64], index: 5, kind: input, shape index: {}]   ;;  %s1387_s6 = inlined_call_operand.vmem [shape: f32[32,64], index: 6, kind: input, shape index: {}]   ;;  %s1388_s7 = inlined_call_operand.vmem [shape: f32[1,64], index: 7, kind: input, shape index: {}]   ;;  %s1389_s8 = inlined_call_operand.vmem [shape: f32[1,64], index: 8, kind: input, shape index: {}]   ;;  %s1390_s9 = inlined_call_operand.<no memory space> [shape: f32[1,1], index: 9, kind: input, shape index: {}]   ;;  %s1391_s10 = inlined_call_operand.hbm [shape: f32[16,128], index: 10, kind: output, shape index: {}]  }
   0x1   :  { %v15_v0 = vstv %s1390_s9 }
   0x2   :  { %16 = vst [vmem:[#allocation2] sm:$0x1] %v15_v0 }
   0x3   :  { %17 = vsyncpa [#allocation4], 0 }
   0x4   :  { %19 = vsyncpa [#allocation4 + $0x1], 0 }
   0x5   :  { %20 = vsyncpa [#allocation7], 0 }
   0x6   :  { %21 = vsyncpa [#allocation5], 0 }
   0x7   :  { %23 = vsyncpa [#allocation5 + $0x1], 0  ;;  %s1133_s15 = smov 0   ;;  %s1135_s16 = smov 0  }
   0x8   :  { %s1137_s17 = smov 0   ;;  %s1139_s18 = smov 0  }
   0x9 LB: > { %s1154_s9 = sadd.s32 4294967295, %s1061_s18   ;;  %s772_s19 = sadd.s32 4294967294, %s1061_s18   ;;  %s1061_s18 = sphi %s1139_s18, %s1414_s18   ;;  %s1057_s17 = sphi %s1137_s17, %s1417_s17   ;;  %s1053_s16 = sphi %s1135_s16, %s1416_s16   ;;  %s1049_s15 = sphi %s1133_s15, %s1415_s15  }
   0xa   : > { %p75_p0 = scmp.ne.s32.totalorder %s1053_s16, %s1049_s15  ;;  %p1392_p1 = scmp.eq.s32.totalorder %s1154_s9, 0 }
   0xb   : > { %p273_p3 = scmp.eq.s32.totalorder %s772_s19, 1  ;;  %p773_p5 = scmp.ge.s32.totalorder %s1061_s18, 1 }
   0xc   : > { %p1163_p4 = por %p1392_p1, %p75_p0  ;;  %p280_p7 = scmp.lt.s32.totalorder %s1061_s18, 3 }
   0xd   : > { %p1168_p6 = por %p273_p3, %p75_p0  ;;  %s1063_s23 = smov [#allocation6]  }
   0xe   : > { %s1398_s20 = scalar_select %p1163_p4, 1, 0 }
   0xf   : > { %s1399_s21 = scalar_select %p1168_p6, 1, 0 }
  0x10   : > { %p1173_p8 = pnand %p773_p5, %p280_p7  ;;  %s298_s24 = sshll.u32 %s1063_s23, 4  ;;  %s1177_s24 = int_to_ptr.vmem [resolvable:$true] %s298_s24 }
  0x11   : > { %1400 = sst [smem:[#allocation12_spill]] %s1399_s21  ;;  %s1189_s26 = sadd.s32 1, %s1061_s18  }
  0x12   : > { %s1401_s22 = scalar_select %p1173_p8, 1, 0 }
  0x13   : > { %p865_p9 = pneg %p1173_p8  ;;  %1403 = sst [smem:[#allocation13_spill]] %s1189_s26 }
  0x14   : > { %s62_s27 = sadd.s32 1, %s1057_s17  ;;  %s59_s28 = ssub.s32 %s1061_s18, %s1189_s26 }
  0x15   : > { %p1184_p11 = pnand %p865_p9, %p1392_p1  ;;  %s933_s11 = scalar_lea.hbm %s1385_s4, 1024 }
  0x16   : > { %p934_p12 = scmp.ne.s32.totalorder %s1385_s4, %s933_s11  ;;  %p940_p5 = scmp.lt.u32.totalorder %s933_s11, %s1385_s4 }
  0x17   : > { %p935_p13 = pneg %p1184_p11 }
  0x19   : > { %p936_p0 = pnand %p935_p13, %p934_p12 }
  0x1b   : > { %p937_p3 = pneg %p936_p0 }
  0x1d   : > { %p942_p7 = pnand %p940_p5, %p937_p3 }
  0x1f   : > { %945 = shalt.err (!%p942_p7)
}
  0x20   : > { %s946_s23 = scalar_lea.vmem %s1177_s24, 1024  ;;  %p954_p2 = scmp.lt.s32.totalorder %s1177_s24, %s1177_s24 }
  0x21   : > { %p947_p9 = scmp.ne.s32.totalorder %s1177_s24, %s946_s23  ;;  %p955_p6 = scmp.lt.s32.totalorder %s946_s23, %s946_s23 }
  0x23   : > { %p949_p10 = pnand %p947_p9, %p935_p13  ;;  %p956_p4 = por %p955_p6, %p954_p2 }
  0x25   : > { %p950_p1 = pneg %p949_p10 }
  0x27   : > { %p957_p8 = pnand %p956_p4, %p950_p1 }
  0x29   : > { %960 = shalt.err (!%p957_p8)
}
  0x2a   : > { %s1064_s29 = smov 128   ;;  %s1065_s30 = smov 8  }
  0x2b   : > { %868 = dma.hbm_to_vmem [thread:$0]  (!%p1184_p11), %s1385_s4, 1024, %s1177_s24, [#allocation7], %s1064_s29, %s1064_s29, %s1065_s30  }
  0x2c   : > { %p60_p2 = scmp.eq.s32.totalorder %s59_s28, 0  ;;  %p69_p1 = scmp.ne.s32.totalorder %s1057_s17, %s1053_s16 }
  0x2d   : > { %p70_p4 = scmp.eq.s32.totalorder %s1061_s18, 0  ;;  %p878_p6 = scmp.lt.s32.totalorder %s1061_s18, 2 }
  0x2e   : > { %s1220_s13 = scalar_select %p60_p2, %s1057_s17, %s62_s27  }
  0x2f   : > { %p71_p8 = por %p70_p4, %p69_p1  ;;  %p1404_p10 = scmp.eq.s32.totalorder %s1154_s9, 1 }
  0x30   : > { %s334_s19 = sand.u32 1, %s1057_s17   ;;  %s777_s23 = sshll.u32 %s1061_s18, 7 }
  0x31   : > { %p1224_p12 = por %p1404_p10, %p69_p1  ;;  %s776_s26 = sshll.u32 %s334_s19, 3 }
  0x32   : > { %s1233_s11 = scalar_lea.hbm %s1382_s1, %s777_s23  ;;  %s338_s24 = scalar_lea.vmem [#allocation3], %s776_s26 }
  0x33   : > { %s345_s27 = sshll.u32 %s338_s24, 4  ;;  %p1235_p11 = pnand %p878_p6, %p71_p8  ;;  %s1239_s27 = int_to_ptr.vmem [resolvable:$true] %s345_s27 }
  0x34   : > { %s335_s29 = scalar_lea.sflag [#allocation4], %s334_s19  ;;  %s961_s30 = scalar_lea.hbm %s1233_s11, 128 }
  0x35   : > { %p962_p13 = scmp.ne.s32.totalorder %s1233_s11, %s961_s30  ;;  %p963_p0 = pneg %p1235_p11 }
  0x36   : > { %s966_s12 = scalar_lea.hbm %s1382_s1, 256  ;;  %p967_p7 = scmp.lt.u32.totalorder %s1233_s11, %s1382_s1 }
  0x37   : > { %p964_p3 = pnand %p963_p0, %p962_p13  ;;  %p968_p9 = scmp.lt.u32.totalorder %s966_s12, %s961_s30 }
  0x38   : > { %p970_p1 = scmp.lt.u32.totalorder %s961_s30, %s1233_s11 }
  0x39   : > { %p965_p5 = pneg %p964_p3  ;;  %p969_p2 = por %p968_p9, %p967_p7 }
  0x3b   : > { %p971_p4 = por %p970_p1, %p969_p2 }
  0x3d   : > { %p972_p6 = pnand %p971_p4, %p965_p5 }
  0x3f   : > { %975 = shalt.err (!%p972_p6)
}
  0x40   : > { %s976_s19 = scalar_lea.vmem %s1239_s27, 128  ;;  %s1066_s24 = smov [#allocation3]  }
  0x41   : > { %p977_p8 = scmp.ne.s32.totalorder %s1239_s27, %s976_s19  ;;  %s981_s21 = sshll.u32 %s1066_s24, 4  ;;  %s982_s21 = int_to_ptr.vmem [resolvable:$false] %s981_s21 }
  0x42   : > { %s983_s26 = scalar_lea.vmem %s982_s21, 256  ;;  %p984_p3 = scmp.lt.s32.totalorder %s1239_s27, %s982_s21 }
  0x43   : > { %p979_p10 = pnand %p977_p8, %p963_p0  ;;  %p985_p7 = scmp.lt.s32.totalorder %s983_s26, %s976_s19 }
  0x45   : > { %p980_p13 = pneg %p979_p10  ;;  %p986_p9 = por %p985_p7, %p984_p3 }
  0x47   : > { %p987_p2 = pnand %p986_p9, %p980_p13 }
  0x49   : > { %990 = shalt.err (!%p987_p2)
}
  0x4a   : > { %872 = dma.hbm_to_vmem [thread:$0]  (!%p1235_p11), %s1233_s11, 128, %s1239_s27, %s335_s29  }
  0x4b   : > { %p1407_p5 = scmp.ne.s32.totalorder %s1401_s22, 0 }
  0x4c   : > { %s1269_s30 = sand.u32 (!%p1407_p5), 1, %s1053_s16   ;;  %p1408_p0 = scmp.ne.s32.totalorder (!%p1407_p5), %s1398_s20, 0 }
  0x4d   : > { %354 = sbr.rel (%p1407_p5) target bundleno = 1410 (0x582), region = 60  ;;  %s779_s12 = sshll.u32 (!%p1407_p5), %s1269_s30, 3 }
  0x4e   : > { %s357_s23 = scalar_lea.sflag (!%p1407_p5), [#allocation4], %s1269_s30  ;;  %s1275_s25 = scalar_lea.vmem (!%p1407_p5), [#allocation3], %s779_s12 }
  0x54   : > { %1036 = dma.done.wait (%p1408_p0), %s357_s23, 128  }
  0x55   : > { %1038 = vsyncadd (%p1408_p0), %s357_s23, 4294967168  ;;  %p1409_p11 = scmp.eq.s32.totalorder %s1154_s9, 0 }
  0x57   : > { %1040 = dma.done.wait (%p1409_p11), [#allocation7], 1024   ;;  %p1410_p1 = pmov %p1409_p11 }
  0x58   : > { %p405_p4 = scmp.lt.s32.totalorder %s1154_s9, 1  ;;  %v1067_v1 = vmov 0   ;;  %v1068_v2 = vmov 0.0|0.0   ;;  %v433_v4 = vld [vmem:[#allocation6] sm:$0xff]  ;;  %v434_v5 = vld [vmem:[#allocation6 + $0x8] sm:$0xff]  ;;  %v435_v7 = vld [vmem:[#allocation6 + $0x10] sm:$0xff] }
  0x59   : > { %1042 = vsyncadd (%p1410_p1), [#allocation7], 4294966272  ;;  %923 = vset.pattern.permute.xlu0 %v1067_v1  ;;  %839 = vmatprep.subr.bf16.mxu0 %v1068_v2  ;;  %v840_v6 = vpack.c.bf16 %v434_v5, %v433_v4  ;;  %v436_v8 = vld [vmem:[#allocation6 + $0x18] sm:$0xff]  ;;  %v437_v10 = vld [vmem:[#allocation6 + $0x20] sm:$0xff]  ;;  %vm1069_vm0 = vmmov 0   ;;  %v1070_v12 = vmov 0.0  }
  0x5a   : > { %s406_s22 = scalar_select %p405_p4, %s1154_s9, 1  ;;  %851 = vmatprep.subr.bf16.mxu1 %v1068_v2  ;;  %924 = vset.pattern.permute.xlu1 %v1067_v1  ;;  %v843_v9 = vpack.c.bf16 %v436_v8, %v435_v7  ;;  %v438_v11 = vld [vmem:[#allocation6 + $0x28] sm:$0xff]  ;;  %v410_v14 = vld [vmem:[%s1275_s25] sm:$0xff]  ;;  %vm448_vm1 = vcmask 523264   ;;  %vm534_vm2 = vcmask 261120   ;;  %vm663_vm3 = vcmask 785408  }
  0x5b   : > { %841 = vmatpush3.bf16.msra.mxu0 %v840_v6  ;;  %825 = vmatprep.mubr.msk.f32.mxu0 %vm1069_vm0, %v1070_v12  ;;  %v846_v13 = vpack.c.bf16 %v438_v11, %v437_v10  ;;  %v439_v15 = vld [vmem:[#allocation6 + $0x30] sm:$0xff]  ;;  %v440_v16 = vld [vmem:[#allocation6 + $0x38] sm:$0xff]  ;;  %s1071_s29 = smov 32   ;;  %v783_v18 = vld [vmem:[%s1383_s2] ss:$0 sm:$0xff]  ;;  %s792_s11 = sshll.u32 %s1154_s9, 7 }
  0x5c   : > { %s782_s20 = sshll.u32 %s406_s22, 3  ;;  %842 = vmatprep.subr.bf16.mxu0 %v1068_v2  ;;  %836 = vmatprep.mubr.msk.f32.mxu1 %vm1069_vm0, %v1070_v12  ;;  %v849_v17 = vpack.c.bf16 %v440_v16, %v439_v15  ;;  %v784_v19 = vld [vmem:[%s1384_s3] ss:$0 sm:$0xff]  ;;  %s1072_s22 = smov 96   ;;  %v547_v41 = vld [vmem:[%s1387_s6 + $0x8] sm:$0xff]  ;;  %v548_v42 = vld [vmem:[%s1387_s6 + $0x10] sm:$0xff] }
  0x5d   : > { %s408_s28 = scalar_lea.vmem %s1381_s0, %s782_s20  ;;  %v785_v24 = vld [vmem:[%s1386_s5] ss:$0 sm:$0xff]  ;;  %v549_v44 = vld [vmem:[%s1387_s6 + $0x18] sm:$0xff]  ;;  %s1073_s20 = smov 64  }
  0x5e   : > { %v409_v3 = vld [vmem:[%s408_s28] sm:$0xff]  ;;  %v855_v45 = vpack.c.bf16 %v549_v44, %v548_v42  ;;  %s404_s27 = scalar_lea.vmem [#allocation8], %s779_s12  ;;  %s1337_s24 = scalar_lea.hbm %s1391_s10, %s792_s11 }
  0x5f   : > { %414 = vperm.xlu0 %923, %v409_v3   ;;  %844 = vmatpush3.bf16.msra.mxu0 %v843_v9  ;;  %v546_v40 = vld [vmem:[%s1387_s6] sm:$0xff]  ;;  %s680_s28 = sshll.u32 %s404_s27, 4  ;;  %s667_s9 = scalar_lea.sflag [#allocation5], %s1269_s30  ;;  %s1339_s28 = int_to_ptr.vmem [resolvable:$true] %s680_s28 }
  0x60   : > { %845 = vmatprep.subr.bf16.mxu0 %v1068_v2  ;;  %v852_v43 = vpack.c.bf16 %v547_v41, %v546_v40  ;;  %v787_v49 = vld [vmem:[%s1388_s7] ss:$0 sm:$0xff]  ;;  %s991_s12 = scalar_lea.vmem %s1339_s28, 128  ;;  %s1074_s21 = smov [#allocation8]  }
  0x61   : > { %v789_v53 = vld [vmem:[%s1389_s8] ss:$0 sm:$0xff]  ;;  %p992_p6 = scmp.ne.s32.totalorder %s1339_s28, %s991_s12  ;;  %s995_s26 = sshll.u32 %s1074_s21, 4  ;;  %s996_s26 = int_to_ptr.vmem [resolvable:$false] %s995_s26 }
  0x62   : > { %853 = vmatpush3.bf16.msra.mxu1 %v852_v43  ;;  %v790_v57 = vld [vmem:[#allocation2] ss:$0 sm:$0xff]  ;;  %s997_s23 = scalar_lea.vmem %s996_s26, 256  ;;  %p998_p13 = scmp.lt.s32.totalorder %s1339_s28, %s996_s26 }
  0x63   : > { %525 = vrot.lane.b32.xlu0 %v410_v14, %s1071_s29  ;;  %847 = vmatpush3.bf16.msra.mxu0 %v846_v13  ;;  %p993_p8 = pnand %p992_p6, %p1224_p12  ;;  %p999_p3 = scmp.lt.s32.totalorder %s997_s23, %s991_s12 }
  0x64   : > { %848 = vmatprep.subr.bf16.mxu0 %v1068_v2  ;;  %854 = vmatprep.subr.bf16.mxu1 %v1068_v2 }
  0x65   : > { %p994_p10 = pneg %p993_p8  ;;  %p1000_p7 = por %p999_p3, %p998_p13 }
  0x66   : > { %856 = vmatpush3.bf16.msra.mxu1 %v855_v45 }
  0x67   : > { %850 = vmatpush3.bf16.msra.mxu0 %v849_v17  ;;  %p1001_p9 = pnand %p1000_p7, %p994_p10 }
  0xde   : > { %v415_v20 = vpop.permute.xlu0 %414 }
  0xdf   : > { %v423_v21 = vmul.f32 %v783_v18, %v415_v20 }
  0xe1   : > { %v431_v22 = vadd.f32 %v784_v19, %v423_v21 }
  0xe2   : > { %v526_v29 = vpop.permute.xlu0 %525 }
  0xe3   : > { %v432_v23 = vmax.f32 %v431_v22, 0.0 }
  0xe5   : > { %826 = vmatmul.mubr.msk.f32.vlgmr.msra.gmra.mrb[0].mxu0 %vm448_vm1, %v432_v23 }
 0x1b8   : > { %v518_v25 = vpop.f32.mrb[0].mxu0 }
 0x1b9   : > { %v519_v26 = vadd.f32 %v785_v24, %v518_v25  ;;  %v827_v27 = vpop.f32.mrb[1].mxu0 }
 0x1bb   : > { %v522_v28 = vmul.f32 1.442695, %v519_v26 }
 0x1bd   : > { %925 = vpow2.f32 %v522_v28 }
 0x1c7   : > { %v926_v30 = vpop.eup %925 }
 0x1c8   : > { %v528_v31 = vmul.f32 %v926_v30, %v526_v29  ;;  %v661_v0 = vsel %vm534_vm2, %v519_v26, %v926_v30 }
 0x1ca   : > { %530 = vrot.lane.b32.xlu1 %v528_v31, %s1072_s22 }
 0x23c   : > { %v531_v32 = vpop.permute.xlu1 %530 }
 0x23d   : > { %v533_v33 = vadd.f32 %v531_v32, %v519_v26 }
 0x23f   : > { %v535_v34 = vsel %vm534_vm2, %v533_v33, -inf }
 0x240   : > { %536 = vmax.xlane.f32.xlu1 %v535_v34 }
 0x2cd   : > { %v537_v35 = vpop.xlane.xlu1 %536 }
 0x2ce   : > { %v538_v36 = vsub.f32 %v533_v33, %v537_v35 }
 0x2d0   : > { %v539_v37 = vmul.f32 1.442695, %v538_v36 }
 0x2d2   : > { %927 = vpow2.f32 %v539_v37 }
 0x2dc   : > { %v928_v38 = vpop.eup %927 }
 0x2dd   : > { %v541_v39 = vsel %vm534_vm2, %v928_v38, 0.0 }
 0x2de   : > { %542 = vadd.xlane.f32.xlu0 %v541_v39 }
 0x36b   : > { %v543_v46 = vpop.xlane.xlu0 %542 }
 0x36c   : > { %929 = vrcp.f32 %v543_v46 }
 0x376   : > { %v930_v47 = vpop.eup %929 }
 0x377   : > { %v545_v48 = vmul.f32 %v930_v47, %v928_v38 }
 0x379   : > { %837 = vmatmul.mubr.msk.f32.vlgmr.msra.gmra.mrb[0].mxu1 %vm534_vm2, %v545_v48 }
 0x44c   : > { %v626_v50 = vpop.f32.mrb[0].mxu1 }
 0x44d   : > { %v627_v51 = vadd.f32 %v787_v49, %v626_v50  ;;  %v838_v52 = vpop.f32.mrb[1].mxu1 }
 0x44f   : > { %v630_v54 = vmax.f32 %v627_v51, 0.0 }
 0x451   : > { %v638_v55 = vmul.f32 %v789_v53, %v630_v54 }
 0x453   : > { %v639_v56 = vsel %vm448_vm1, %v638_v55, 0.0 }
 0x454   : > { %640 = vadd.xlane.f32.xlu0 %v639_v56 }
 0x46a   : > { %658 = vrot.lane.b32.xlu0 %v545_v48, %s1073_s20 }
 0x4e1   : > { %v641_v58 = vpop.xlane.xlu0 %640 }
 0x4e2   : > { %v649_v59 = vadd.f32 %v790_v57, %v641_v58 }
 0x4e4   : > { %v650_v60 = vsub.f32 %v649_v59, %v649_v59 }
 0x4e5   : > { %v659_v63 = vpop.permute.xlu0 %658 }
 0x4e6   : > { %v651_v61 = vmul.f32 1.442695, %v650_v60  ;;  %v662_v1 = vsel %vm448_vm1, %v661_v0, %v659_v63 }
 0x4e8   : > { %931 = vpow2.f32 %v651_v61 }
 0x4f2   : > { %v932_v62 = vpop.eup %931 }
 0x4f3   : > { %655 = vperm.xlu1 %924, %v932_v62  }
 0x572   : > { %v656_v2 = vpop.permute.xlu1 %655 }
 0x573   : > { %v664_v3 = vsel %vm663_vm3, %v662_v1, %v656_v2 }
 0x574   : > { %665 = vst [vmem:[%s404_s27] sm:$0xff] %v664_v3 }
 0x575   : > { %1004 = shalt.err (!%p1001_p9)
}
 0x576   : > { %s1005_s30 = scalar_lea.hbm %s1337_s24, 128  ;;  %s1009_s20 = scalar_lea.hbm %s1391_s10, 256 }
 0x577   : > { %p1006_p2 = scmp.ne.s32.totalorder %s1337_s24, %s1005_s30  ;;  %p1010_p11 = scmp.lt.u32.totalorder %s1337_s24, %s1391_s10 }
 0x578   : > { %p1011_p1 = scmp.lt.u32.totalorder %s1009_s20, %s1005_s30  ;;  %p1013_p6 = scmp.lt.u32.totalorder %s1005_s30, %s1337_s24 }
 0x579   : > { %p1007_p5 = pnand %p1006_p2, %p1224_p12 }
 0x57a   : > { %p1012_p4 = por %p1011_p1, %p1010_p11 }
 0x57b   : > { %p1008_p0 = pneg %p1007_p5 }
 0x57c   : > { %p1014_p8 = por %p1013_p6, %p1012_p4 }
 0x57e   : > { %p1015_p10 = pnand %p1014_p8, %p1008_p0 }
 0x580   : > { %1018 = shalt.err (!%p1015_p10)
}
 0x581   : > { %863 = dma.vmem_to_hbm [thread:$0]  (%p1224_p12), %s1339_s28, 128, %s1337_s24, %s667_s9  }
 0x582 PF: > { %s1411_s29 = sld [smem:[#allocation12_spill]]  ;;  %s692_s19 = sand.u32 1, %s1049_s15  }
 0x583   : > { %p1413_p3 = scmp.ge.s32.totalorder %s1061_s18, 2  ;;  %s693_s12 = scalar_lea.sflag [#allocation5], %s692_s19 }
 0x588   : > { %p1412_p13 = scmp.ne.s32.totalorder %s1411_s29, 0 }
 0x58a   : > { %p874_p7 = pnand %p1413_p3, %p1412_p13 }
 0x58c   : > { %1044 = dma.done.wait (!%p874_p7), %s693_s12, 128  }
 0x58d   : > { %1046 = vsyncadd (!%p874_p7), %s693_s12, 4294967168  ;;  %s1414_s18 = sld [smem:[#allocation13_spill]]  ;;  %s1415_s15 = smov %s1053_s16 }
 0x58e   : > { %s1416_s16 = smov %s1057_s17  ;;  %s1417_s17 = smov %s1220_s13 }
 0x593   : > { %p26_p9 = scmp.ge.s32.totalorder %s1414_s18, 4  }
 0x595   :  { %28 = sbr.rel (!%p26_p9) target bundleno = 9 (0x9), region = 112 }
 0x59c   :  { %698 = vsyncpa [#allocation4], 1 }
 0x59d   :  { %700 = vsyncpa [#allocation4 + $0x1], 1 }
 0x59e   :  { %701 = vsyncpa [#allocation7], 1 }
 0x59f   :  { %702 = vsyncpa [#allocation5], 1 }
 0x5a0   :  { %704 = vsyncpa [#allocation5 + $0x1], 1 }

</bundles_post_ra>
